<compile_context>
chip_gen: v5e
topology: v5e:2x2
jax: 0.10.0
libtpu: 0.0.40
codegen_flags: <defaults>
</compile_context>

<pallas_src>
import jax
import jax.numpy as jnp
from jax.experimental import pallas as pl
from jax.experimental.pallas import tpu as pltpu


def _rope_kernel(pos_ref, invf_ref, out_ref):
    # pos_ref:  (tile, 1) int32  -- flattened (batch*seq) positions, rows on sublanes
    # invf_ref: (1, half) f32    -- same tiny block every step (constant index_map)
    # out_ref:  (tile, E) f32    -- [ sin(angles) | cos(angles) ]
    half = invf_ref.shape[-1]
    pos = pos_ref[...].astype(jnp.float32)          # (tile, 1)
    invf = invf_ref[...]                            # (1, half)
    angles = pos * invf                             # (tile, half) VPU broadcast
    if half % 128 == 0:
        # Lane-aligned fast path: two unmasked in-place stores, no temporary.
        out_ref[:, :half] = jnp.sin(angles)
        out_ref[:, half:] = jnp.cos(angles)
    else:
        # Misaligned cos offset -> build the row once, single full-width store.
        out_ref[...] = jnp.concatenate([jnp.sin(angles), jnp.cos(angles)], axis=-1)


def rotary_positional_embedding(positions, embed_size, max_len):
    """positions: int32 [B, S]. Returns f32 [B, min(S, max_len), embed_size]."""
    assert embed_size % 2 == 0, "embed_size must be even"
    half = embed_size // 2

    # Deterministic "parameter", identical to the torch module's inv_freq.
    inv_freq = 1.0 / (10000.0 ** (jnp.arange(0, embed_size, 2, dtype=jnp.float32)
                                  / embed_size))
    inv_freq = inv_freq.reshape(1, half)

    # Equivalent to slicing the output [:, :max_len, :] (op is pointwise in S).
    positions = positions[:, :max_len]
    B, S = positions.shape
    N = B * S

    # Positions as a column so rows map to sublanes inside the kernel.
    pos_col = positions.reshape(N, 1).astype(jnp.int32)

    # Tile selection: cap at 1024 rows (VMEM + diminishing returns), but force
    # >= 2 grid steps when there is enough work so both v7x TCs participate.
    if N < 16:
        tile = N                                  # single full-extent block
    else:
        tile = min(1024, ((pl.cdiv(N, 2) + 7) // 8) * 8)
    grid = (pl.cdiv(N, tile),)

    out = pl.pallas_call(
        _rope_kernel,
        out_shape=jax.ShapeDtypeStruct((N, embed_size), jnp.float32),
        grid=grid,
        in_specs=[
            pl.BlockSpec((tile, 1), lambda i: (i, 0)),
            pl.BlockSpec((1, half), lambda i: (0, 0)),
        ],
        out_specs=pl.BlockSpec((tile, embed_size), lambda i: (i, 0)),
        compiler_params=pltpu.CompilerParams(
            dimension_semantics=("parallel",)),
        cost_estimate=pl.CostEstimate(
            flops=N * half,                       # one mul per angle
            transcendentals=N * embed_size,       # sin + cos, N*half each
            bytes_accessed=N * 4 + half * 4 + N * embed_size * 4),
    )(pos_col, inv_freq)

    return out.reshape(B, S, embed_size)


def _reference(positions, embed_size, max_len):
    inv_freq = 1.0 / (10000.0 ** (jnp.arange(0, embed_size, 2, dtype=jnp.float32)
                                  / embed_size))
    angles = positions.astype(jnp.float32)[..., None] * inv_freq
    pe = jnp.concatenate([jnp.sin(angles), jnp.cos(angles)], axis=-1)
    return pe[:, :max_len, :]


if __name__ == "__main__":
    embed_size, max_len = 768, 512

    # Small case (two tiles of 8 rows), module-consistent shapes.
    key = jax.random.PRNGKey(0)
    batch, seq = 2, 8
    positions = jax.random.randint(key, (batch, seq), 0, max_len, dtype=jnp.int32)
    out = jax.block_until_ready(
        rotary_positional_embedding(positions, embed_size, max_len))
    ref = _reference(positions, embed_size, max_len)
    assert out.shape == ref.shape, (out.shape, ref.shape)
    assert jnp.allclose(out, ref, atol=1e-5, rtol=1e-5), "mismatch vs reference (small)"

    # Larger case: exercises max_len clipping and the multi-tile pipelined path.
    positions2 = jax.random.randint(jax.random.PRNGKey(1), (4, 600), 0, max_len,
                                    dtype=jnp.int32)
    out2 = jax.block_until_ready(
        rotary_positional_embedding(positions2, embed_size, max_len))
    ref2 = _reference(positions2, embed_size, max_len)
    assert out2.shape == ref2.shape, (out2.shape, ref2.shape)
    assert jnp.allclose(out2, ref2, atol=1e-5, rtol=1e-5), "mismatch vs reference (tiled)"

    print("KERNEL_OK")
</pallas_src>

<mosaic_0001>
module attributes {stable_mosaic.version = 11 : i64} {
  func.func @_rope_kernel(%arg0: i32, %arg1: memref<8x1xi32, #tpu.memory_space<vmem>>, %arg2: memref<1x384xf32, #tpu.memory_space<vmem>>, %arg3: memref<8x768xf32, #tpu.memory_space<vmem>>) attributes {dimension_semantics = [#tpu.dimension_semantics<parallel>], iteration_bounds = array<i64: 2>, scalar_prefetch = 0 : i64, scratch_operands = 0 : i64, tpu.core_type = #tpu.core_type<tc>, window_params = [{transform_indices = @transform_0, window_bounds = array<i64: 8, 1>}, {pipeline_mode = #tpu.pipeline_mode<synchronous>, transform_indices = @transform_1, window_bounds = array<i64: 1, 384>}, {transform_indices = @transform_2, window_bounds = array<i64: 8, 768>}]} {
    %c0 = arith.constant 0 : index
    %c0_0 = arith.constant 0 : index
    %0 = vector.load %arg1[%c0, %c0_0] : memref<8x1xi32, #tpu.memory_space<vmem>>, vector<8x1xi32>
    %1 = arith.sitofp %0 : vector<8x1xi32> to vector<8x1xf32>
    %c0_1 = arith.constant 0 : index
    %c0_2 = arith.constant 0 : index
    %2 = vector.load %arg2[%c0_1, %c0_2] : memref<1x384xf32, #tpu.memory_space<vmem>>, vector<1x384xf32>
    %3 = vector.broadcast %1 : vector<8x1xf32> to vector<8x384xf32>
    %4 = vector.broadcast %2 : vector<1x384xf32> to vector<8x384xf32>
    %5 = arith.mulf %3, %4 : vector<8x384xf32>
    %6 = math.sin %5 : vector<8x384xf32>
    %c0_3 = arith.constant 0 : index
    %c0_4 = arith.constant 0 : index
    %7 = vector.load %arg3[%c0_3, %c0_4] : memref<8x768xf32, #tpu.memory_space<vmem>>, vector<8x384xf32>
    tpu.vector_store %arg3[%c0_3, %c0_4], %6 {strides = array<i32>} : memref<8x768xf32, #tpu.memory_space<vmem>>, vector<8x384xf32>,
    %8 = math.cos %5 : vector<8x384xf32>
    %c0_5 = arith.constant 0 : index
    %c384 = arith.constant 384 : index
    %9 = vector.load %arg3[%c0_5, %c384] : memref<8x768xf32, #tpu.memory_space<vmem>>, vector<8x384xf32>
    tpu.vector_store %arg3[%c0_5, %c384], %8 {strides = array<i32>} : memref<8x768xf32, #tpu.memory_space<vmem>>, vector<8x384xf32>,
    return
  }
  func.func @transform_0(%arg0: i32) -> (i32, i32) {
    %c0_i32 = arith.constant 0 : i32
    %c0_i32_0 = arith.constant 0 : i32
    return %arg0, %c0_i32 : i32, i32
  }
  func.func @transform_1(%arg0: i32) -> (i32, i32) {
    %c0_i32 = arith.constant 0 : i32
    %c0_i32_0 = arith.constant 0 : i32
    %c0_i32_1 = arith.constant 0 : i32
    return %c0_i32, %c0_i32_0 : i32, i32
  }
  func.func @transform_2(%arg0: i32) -> (i32, i32) {
    %c0_i32 = arith.constant 0 : i32
    %c0_i32_0 = arith.constant 0 : i32
    return %arg0, %c0_i32 : i32, i32
  }
}

</mosaic_0001>

<bundles_post_ra>
// kernel: tpu_custom_call.1
= control target key start
LH: loop header
LB: loop body
LE: loop exit
PB: predicated region body
PF: predicated region fallthrough
CT: control target
= control target key end

     0   :  { %7 = vsyncpa [#allocation3], 0  ;;  %s1774_s0 = inlined_call_operand.vmem [shape: s32[16,1], index: 0, kind: input, shape index: {}]   ;;  %s1775_s1 = inlined_call_operand.vmem [shape: f32[1,384], index: 1, kind: input, shape index: {}]   ;;  %s1776_s2 = inlined_call_operand.hbm [shape: f32[16,768], index: 2, kind: output, shape index: {}]  }
   0x1   :  { %9 = vsyncpa [#allocation3 + $0x1], 0  ;;  %s1327_s9 = smov 0   ;;  %s1329_s10 = smov 0  }
   0x2   :  { %s1331_s11 = smov 0   ;;  %s1333_s12 = smov 0  }
   0x3 LB: > { %s1348_s13 = sadd.s32 4294967295, %s1303_s12   ;;  %s1166_s14 = sadd.s32 4294967294, %s1303_s12   ;;  %s1303_s12 = sphi %s1333_s12, %s1786_s12   ;;  %s1299_s11 = sphi %s1331_s11, %s1785_s11   ;;  %s1295_s10 = sphi %s1329_s10, %s1784_s10   ;;  %s1291_s9 = sphi %s1327_s9, %s1783_s9  }
   0x4   : > { %s1352_s15 = sadd.s32 1, %s1303_s12   ;;  %s69_s16 = sadd.s32 1, %s1299_s11 }
   0x5   : > { %s66_s17 = ssub.s32 %s1303_s12, %s1352_s15  ;;  %p79_p0 = scmp.ne.s32.totalorder %s1299_s11, %s1295_s10 }
   0x6   : > { %p67_p1 = scmp.eq.s32.totalorder %s66_s17, 0  ;;  %p80_p2 = scmp.eq.s32.totalorder %s1348_s13, 1 }
   0x7   : > { %p85_p3 = scmp.ne.s32.totalorder %s1295_s10, %s1291_s9  ;;  %p86_p4 = scmp.eq.s32.totalorder %s1166_s14, 1 }
   0x8   : > { %s1363_s18 = scalar_select %p67_p1, %s1299_s11, %s69_s16  }
   0x9   : > { %p1365_p5 = por %p80_p2, %p79_p0  ;;  %p1369_p6 = por %p86_p4, %p85_p3 }
   0xa   : > { %p1169_p7 = scmp.ge.s32.totalorder %s1303_s12, 1  ;;  %p114_p8 = scmp.lt.s32.totalorder %s1303_s12, 3 }
   0xc   : > { %p115_p9 = pnand %p1169_p7, %p114_p8 }
   0xd   : > { %p135_p10 = scmp.lt.s32.totalorder (!%p115_p9), %s1348_s13, 1  ;;  %s132_s28 = sand.u32 (!%p115_p9), 1, %s1295_s10  }
   0xe   : > { %118 = sbr.rel (%p115_p9) target bundleno = 297 (0x129), region = 28 }
   0xf   : > { %s1192_s29 = smul.u32 (!%p115_p9), 48, %s132_s28 }
  0x10   : > { %s1193_s3 = smul.u32 (!%p115_p9), 48, %s1348_s13 }
  0x11   : > { %s1701_s30 = scalar_lea.vmem (!%p115_p9), [#allocation2], %s1192_s29 }
  0x12   : > { %s1102_s6 = scalar_lea.hbm (!%p115_p9), %s1776_s2, %s1193_s3  ;;  %s1104_s7 = sshll.u32 (!%p115_p9), %s1701_s30, 4  ;;  %s1105_s7 = int_to_ptr.vmem [resolvable:$true] %s1104_s7 }
  0x13   : > { %v1305_v0 = vmov 0   ;;  %s136_s21 = scalar_select %p135_p10, %s1348_s13, 1  ;;  %v141_v3 = vld [vmem:[%s1775_s1] sm:$0x7]  ;;  %v1306_v38 = vmov 683565275  }
  0x14   : > { %1240 = vset.pattern.permute.xlu0 %v1305_v0  ;;  %v148_v4 = vperm.slane %v141_v3, 0  ;;  %v149_v5 = vperm.slane %v141_v3, 1  ;;  %v150_v6 = vperm.slane %v141_v3, 2  ;;  %v1307_v40 = vmov 2475754826   ;;  %s1106_s8 = sshll.u32 %s1102_s6, 4  ;;  %s1107_s8 = int_to_ptr.hbm [resolvable:$true] %s1106_s8 }
  0x15   : > { %s1170_s22 = sshll.u32 %s136_s21, 3  ;;  %v1308_v44 = vmov 2131351028   ;;  %v1309_v47 = vmov 2102212464   ;;  %s1091_s13 = scalar_lea.sflag [#allocation3], %s132_s28 }
  0x16   : > { %s138_s25 = scalar_lea.vmem %s1774_s0, %s1170_s22  ;;  %v1310_v50 = vmov 920167782   ;;  %v1311_v53 = vmov 1326507024   ;;  %s1255_s14 = sshra.s32 %s1107_s8, 4  ;;  %s1256_s14 = int_to_ptr.hbm [resolvable:$true] %s1255_s14 }
  0x17   : > { %v139_v1 = vld [vmem:[%s138_s25] sm:$0xff]  ;;  %s1257_s16 = scalar_lea.hbm %s1256_s14, 48  ;;  %s1261_s22 = scalar_lea.hbm %s1776_s2, 96 }
  0x18   : > { %v140_v2 = vcvt.s32.f32 %v139_v1  ;;  %p1258_p11 = scmp.ne.s32.totalorder %s1256_s14, %s1257_s16  ;;  %p1262_p0 = scmp.lt.s32.totalorder %s1256_s14, %s1776_s2 }
  0x19   : > { %p1263_p1 = scmp.lt.s32.totalorder %s1261_s22, %s1257_s16 }
  0x1a   : > { %144 = vperm.xlu0 %1240, %v140_v2   ;;  %p1259_p12 = pnand %p1258_p11, %p1365_p5 }
  0x1b   : > { %p1264_p2 = por %p1263_p1, %p1262_p0 }
  0x1c   : > { %p1260_p13 = pneg %p1259_p12 }
  0x1e   : > { %p1265_p3 = pnand %p1264_p2, %p1260_p13 }
  0x8c   : > { %v145_v7 = vpop.permute.xlu0 %144 }
  0x8d   : > { %v1384_v8 = vmul.f32 %v148_v4, %v145_v7  ;;  %v1386_v9 = vmul.f32 %v149_v5, %v145_v7  ;;  %v1388_v10 = vmul.f32 %v150_v6, %v145_v7 }
  0x8f   : > { %v157_v11 = vand.u32 2147483647, %v1384_v8  ;;  %v160_v12 = vand.u32 2139095040, %v1384_v8  ;;  %v312_v13 = vand.u32 2147483647, %v1386_v9  ;;  %v315_v14 = vand.u32 2139095040, %v1386_v9 }
  0x90   : > { %v470_v19 = vand.u32 2139095040, %v1388_v10 }
  0x91   : > { %v161_v15 = vshrl.u32 %v160_v12, 23  ;;  %v164_v16 = vand.u32 8388607, %v157_v11  ;;  %v316_v17 = vshrl.u32 %v315_v14, 23  ;;  %v319_v18 = vand.u32 8388607, %v312_v13 }
  0x92   : > { %v471_v26 = vshrl.u32 %v470_v19, 23 }
  0x93   : > { %v1171_v20 = vadd.s32 4294967169, %v161_v15  ;;  %v165_v21 = vor.u32 8388608, %v164_v16  ;;  %v1174_v22 = vadd.s32 4294967169, %v316_v17  ;;  %v320_v23 = vor.u32 8388608, %v319_v18 }
  0x94   : > { %v1403_v32 = vadd.s32 4294967169, %v471_v26 }
  0x95   : > { %v167_v24 = vadd.s32 1, %v1171_v20  ;;  %v322_v25 = vadd.s32 1, %v1174_v22  ;;  %v1399_v27 = vshll.u32 %v165_v21, 8  ;;  %v1401_v29 = vshll.u32 %v320_v23, 8 }
  0x97   : > { %vm168_vm0 = vcmp.gt.s32.totalorder %v167_v24, 0  ;;  %vm323_vm1 = vcmp.gt.s32.totalorder %v322_v25, 0  ;;  %v1406_v34 = vand.u32 65535, %v1399_v27  ;;  %v1409_v35 = vshrl.u32 %v1399_v27, 16 }
  0x98   : > { %v169_v28 = vsel %vm168_vm0, %v167_v24, 0  ;;  %v324_v31 = vsel %vm323_vm1, %v322_v25, 0  ;;  %v1418_v42 = vand.u32 65535, %v1401_v29 }
  0x99   : > { %v171_v30 = vand.u32 31, %v169_v28  ;;  %v1411_v36 = vand.u32 31, %v324_v31  ;;  %v1413_v37 = vshrl.u32 %v169_v28, 5  ;;  %v1460_v23 = vshrl.u32 %v324_v31, 5 }
  0x9b   : > { %v172_v33 = vsub.s32 32, %v171_v30  ;;  %v174_v39 = vshll.u32 %v1306_v38, %v171_v30  ;;  %v177_v41 = vshll.u32 %v1307_v40, %v171_v30  ;;  %v180_v46 = vshll.u32 %v1308_v44, %v171_v30 }
  0x9c   : > { %v183_v49 = vshll.u32 %v1309_v47, %v171_v30  ;;  %v186_v52 = vshll.u32 %v1310_v50, %v171_v30  ;;  %v1429_v58 = vsub.s32 32, %v1411_v36  ;;  %vm189_vm2 = vcmp.lt.s32.totalorder %v1413_v37, 1 }
  0x9d   : > { %v175_v43 = vshrl.u32 %v1307_v40, %v172_v33  ;;  %v178_v45 = vshrl.u32 %v1308_v44, %v172_v33  ;;  %v181_v48 = vshrl.u32 %v1309_v47, %v172_v33  ;;  %v184_v51 = vshrl.u32 %v1310_v50, %v172_v33 }
  0x9e   : > { %v187_v54 = vshrl.u32 %v1311_v53, %v172_v33  ;;  %vm190_vm3 = vcmp.lt.s32.totalorder %v1413_v37, 2  ;;  %v173_v61 = vshrl.u32 %v1306_v38, %v172_v33  ;;  %vm192_vm4 = vcmp.lt.s32.totalorder %v1413_v37, 4 }
  0x9f   : > { %v176_v55 = vor.u32 %v175_v43, %v174_v39  ;;  %v179_v56 = vor.u32 %v178_v45, %v177_v41  ;;  %v182_v57 = vor.u32 %v181_v48, %v180_v46  ;;  %v185_v59 = vor.u32 %v184_v51, %v183_v49 }
  0xa0   : > { %v188_v60 = vor.u32 %v187_v54, %v186_v52  ;;  %vm191_vm5 = vcmp.lt.s32.totalorder %v1413_v37, 3  ;;  %v329_v3 = vshll.u32 %v1306_v38, %v1411_v36  ;;  %v330_v7 = vshrl.u32 %v1307_v40, %v1429_v58 }
  0xa1   : > { %v197_v62 = vsel %vm189_vm2, %v176_v55, %v179_v56  ;;  %v201_v63 = vsel %vm189_vm2, %v179_v56, %v182_v57  ;;  %v198_v1 = vsel %vm192_vm4, %v185_v59, 920167782  ;;  %v194_v4 = vsel %vm192_vm4, %v182_v57, 2102212464 }
  0xa2   : > { %v202_v2 = vsel %vm192_vm4, %v188_v60, 1326507024  ;;  %v199_v5 = vsel %vm191_vm5, %v182_v57, %v198_v1  ;;  %v332_v15 = vshll.u32 %v1307_v40, %v1411_v36  ;;  %v333_v16 = vshrl.u32 %v1308_v44, %v1429_v58 }
  0xa3   : > { %v203_v6 = vsel %vm191_vm5, %v185_v59, %v202_v2  ;;  %v200_v12 = vsel %vm190_vm3, %v197_v62, %v199_v5  ;;  %v193_v21 = vsel %vm189_vm2, %v173_v61, %v176_v55  ;;  %v195_v22 = vsel %vm191_vm5, %v179_v56, %v194_v4 }
  0xa4   : > { %v204_v14 = vsel %vm190_vm3, %v201_v63, %v203_v6  ;;  %v230_v19 = vand.u32 65535, %v200_v12  ;;  %v231_v20 = vshrl.u32 %v200_v12, 16  ;;  %v1462_v24 = vor.u32 %v330_v7, %v329_v3 }
  0xa5   : > { %v208_v17 = vand.u32 65535, %v204_v14  ;;  %v209_v18 = vshrl.u32 %v204_v14, 16  ;;  %v1466_v28 = vor.u32 %v333_v16, %v332_v15  ;;  %v336_v30 = vshrl.u32 %v1309_v47, %v1429_v58 }
  0xa6   : > { %v233_v39 = vmul.u32 %v231_v20, %v1406_v34  ;;  %v234_v41 = vmul.u32 %v230_v19, %v1409_v35  ;;  %v335_v31 = vshll.u32 %v1308_v44, %v1411_v36  ;;  %v232_v46 = vmul.u32 %v230_v19, %v1406_v34 }
  0xa7   : > { %v211_v25 = vmul.u32 %v209_v18, %v1406_v34  ;;  %v212_v26 = vmul.u32 %v208_v17, %v1409_v35  ;;  %v210_v33 = vmul.u32 %v208_v17, %v1406_v34  ;;  %v213_v43 = vmul.u32 %v209_v18, %v1409_v35 }
  0xa8   : > { %v235_v48 = vmul.u32 %v231_v20, %v1409_v35  ;;  %v236_v54 = vshll.u32 %v233_v39, 16  ;;  %v238_v56 = vshll.u32 %v234_v41, 16  ;;  %v337_v57 = vor.u32 %v336_v30, %v335_v31 }
  0xa9   : > { %v214_v45 = vshll.u32 %v211_v25, 16  ;;  %v215_v49 = vshrl.u32 %v211_v25, 16  ;;  %v216_v51 = vshll.u32 %v212_v26, 16  ;;  %v217_v52 = vshrl.u32 %v212_v26, 16 }
  0xaa   : > { %vm240_vm7 = vc.u32 %v232_v46, %v236_v54  ;;  %v242_v60 = vadd.s32 %v236_v54, %v232_v46  ;;  %v339_v61 = vshrl.u32 %v1310_v50, %v1429_v58  ;;  %v338_v35 = vshll.u32 %v1309_v47, %v1411_v36 }
  0xab   : > { %vm218_vm6 = vc.u32 %v210_v33, %v214_v45  ;;  %v220_v55 = vadd.s32 %v214_v45, %v210_v33  ;;  %v241_v34 = vsel %vm240_vm7, 1, %v1305_v0  ;;  %v341_v2 = vshll.u32 %v1310_v50, %v1411_v36 }
  0xac   : > { %v219_v59 = vsel %vm218_vm6, 1, %v1305_v0  ;;  %v243_v1 = vadd.s32 %v241_v34, %v235_v48  ;;  %vm244_vm9 = vc.u32 %v242_v60, %v238_v56  ;;  %v340_v5 = vor.u32 %v339_v61, %v338_v35 }
  0xad   : > { %v221_v62 = vadd.s32 %v219_v59, %v213_v43  ;;  %vm222_vm8 = vc.u32 %v220_v55, %v216_v51  ;;  %v245_v4 = vsel %vm244_vm9, 1, %v1305_v0  ;;  %v342_v6 = vshrl.u32 %v1311_v53, %v1429_v58 }
  0xae   : > { %v223_v63 = vsel %vm222_vm8, 1, %v1305_v0  ;;  %v237_v7 = vshrl.u32 %v233_v39, 16  ;;  %v239_v12 = vshrl.u32 %v234_v41, 16  ;;  %v1490_v14 = vadd.s32 %v242_v60, %v238_v56 }
  0xaf   : > { %v225_v3 = vadd.s32 %v223_v63, %v221_v62  ;;  %v247_v15 = vadd.s32 %v245_v4, %v243_v1  ;;  %v343_v17 = vor.u32 %v342_v6, %v341_v2  ;;  %vm344_vm10 = vcmp.lt.s32.totalorder %v1460_v23, 1 }
  0xb0   : > { %vm347_vm11 = vcmp.lt.s32.totalorder %v1460_v23, 4  ;;  %vm346_vm12 = vcmp.lt.s32.totalorder %v1460_v23, 3  ;;  %v352_v36 = vsel %vm344_vm10, %v1462_v24, %v1466_v28  ;;  %vm345_vm13 = vcmp.lt.s32.totalorder %v1460_v23, 2 }
  0xb1   : > { %v226_v16 = vadd.s32 %v225_v3, %v215_v49  ;;  %v248_v18 = vadd.s32 %v247_v15, %v237_v7  ;;  %v353_v19 = vsel %vm347_vm11, %v340_v5, 920167782  ;;  %v356_v26 = vsel %vm344_vm10, %v1466_v28, %v337_v57 }
  0xb2   : > { %v354_v25 = vsel %vm346_vm12, %v337_v57, %v353_v19  ;;  %v196_v30 = vsel %vm190_vm3, %v193_v21, %v195_v22  ;;  %v357_v41 = vsel %vm347_vm11, %v343_v17, 1326507024  ;;  %v362_v43 = vshrl.u32 %v1401_v29, 16 }
  0xb3   : > { %v1501_v20 = vadd.s32 %v226_v16, %v217_v52  ;;  %v249_v33 = vadd.s32 %v248_v18, %v239_v12  ;;  %v355_v39 = vsel %vm345_vm13, %v352_v36, %v354_v25  ;;  %v358_v31 = vsel %vm346_vm12, %v340_v5, %v357_v41 }
  0xb4   : > { %v385_v45 = vand.u32 65535, %v355_v39  ;;  %v359_v37 = vsel %vm345_vm13, %v356_v26, %v358_v31  ;;  %v386_v21 = vshrl.u32 %v355_v39, 16  ;;  %v477_v22 = vadd.s32 1, %v1403_v32 }
  0xb5   : > { %vm252_vm14 = vc.u32 %v1501_v20, %v1490_v14  ;;  %v253_v46 = vadd.s32 1, %v249_v33  ;;  %v250_v48 = vmul.u32 %v1399_v27, %v196_v30  ;;  %v363_v49 = vand.u32 65535, %v359_v37 }
  0xb6   : > { %v364_v51 = vshrl.u32 %v359_v37, 16  ;;  %v328_v54 = vshrl.u32 %v1306_v38, %v1429_v58  ;;  %v388_v55 = vmul.u32 %v386_v21, %v1418_v42  ;;  %v389_v56 = vmul.u32 %v385_v45, %v362_v43 }
  0xb7   : > { %v254_v52 = vsel %vm252_vm14, %v253_v46, %v249_v33  ;;  %v349_v60 = vsel %vm347_vm11, %v337_v57, 2102212464  ;;  %v367_v62 = vmul.u32 %v363_v49, %v362_v43  ;;  %v387_v32 = vmul.u32 %v385_v45, %v1418_v42 }
  0xb8   : > { %v255_v59 = vadd.s32 %v254_v52, %v250_v48  ;;  %v366_v61 = vmul.u32 %v364_v51, %v1418_v42  ;;  %v390_v34 = vmul.u32 %v386_v21, %v362_v43  ;;  %v391_v27 = vshll.u32 %v388_v55, 16 }
  0xb9   : > { %vm478_vm15 = vcmp.gt.s32.totalorder %v477_v22, 0  ;;  %v365_v63 = vmul.u32 %v363_v49, %v1418_v42  ;;  %v368_v1 = vmul.u32 %v364_v51, %v362_v43  ;;  %v371_v2 = vshll.u32 %v367_v62, 16 }
  0xba   : > { %v256_v35 = vadd.s32 536870912, %v255_v59  ;;  %v369_v58 = vshll.u32 %v366_v61, 16  ;;  %v393_v3 = vshll.u32 %v389_v56, 16  ;;  %vm395_vm0 = vc.u32 %v387_v32, %v391_v27 }
  0xbb   : > { %v397_v4 = vadd.s32 %v391_v27, %v387_v32  ;;  %v396_v6 = vsel %vm395_vm0, 1, %v1305_v0  ;;  %v467_v15 = vand.u32 2147483647, %v1388_v10  ;;  %v348_v42 = vsel %vm344_vm10, %v328_v54, %v1462_v24 }
  0xbc   : > { %v257_v5 = vshrl.u32 %v256_v35, 30  ;;  %vm373_vm1 = vc.u32 %v365_v63, %v369_v58  ;;  %v375_v57 = vadd.s32 %v369_v58, %v365_v63  ;;  %v398_v12 = vadd.s32 %v396_v6, %v390_v34 }
  0xbd   : > { %v374_v7 = vsel %vm373_vm1, 1, %v1305_v0  ;;  %vm399_vm2 = vc.u32 %v397_v4, %v393_v3  ;;  %v350_v18 = vsel %vm346_vm12, %v1466_v28, %v349_v60  ;;  %v479_v25 = vsel %vm478_vm15, %v477_v22, 0 }
  0xbe   : > { %v258_v16 = vshll.u32 %v257_v5, 30  ;;  %v376_v17 = vadd.s32 %v374_v7, %v368_v1  ;;  %vm377_vm3 = vc.u32 %v375_v57, %v371_v2  ;;  %v400_v19 = vsel %vm399_vm2, 1, %v1305_v0 }
  0xbf   : > { %v378_v36 = vsel %vm377_vm3, 1, %v1305_v0  ;;  %v370_v30 = vshrl.u32 %v366_v61, 16  ;;  %v402_v39 = vadd.s32 %v400_v19, %v398_v12  ;;  %v372_v41 = vshrl.u32 %v367_v62, 16 }
  0xc0   : > { %v259_v26 = vsub.s32 %v255_v59, %v258_v16  ;;  %v380_v33 = vadd.s32 %v378_v36, %v376_v17  ;;  %v392_v31 = vshrl.u32 %v388_v55, 16  ;;  %v1546_v24 = vand.u32 8388607, %v467_v15 }
  0xc1   : > { %v481_v43 = vand.u32 31, %v479_v25  ;;  %v281_v28 = vsub.s32 4, %v257_v5  ;;  %v351_v37 = vsel %vm345_vm13, %v348_v42, %v350_v18  ;;  %v394_v21 = vshrl.u32 %v389_v56, 16 }
  0xc2   : > { %vm260_vm4 = vcmp.lt.s32.totalorder %v259_v26, 0  ;;  %v261_v45 = vsub.s32 0, %v259_v26  ;;  %v381_v46 = vadd.s32 %v380_v33, %v370_v30  ;;  %v403_v22 = vadd.s32 %v402_v39, %v392_v31 }
  0xc3   : > { %v1550_v48 = vsub.s32 32, %v481_v43  ;;  %vm1554_vm5 = vcmp.le.f32.partialorder %v157_v11, 0.7853982  ;;  %vm159_vm6 = vcmp.lt.s32.totalorder %v1384_v8, 0  ;;  %v1561_v55 = vadd.s32 %v397_v4, %v393_v3 }
  0xc4   : > { %v262_v51 = vsel %vm260_vm4, %v261_v45, %v259_v26  ;;  %v1559_v52 = vadd.s32 %v381_v46, %v372_v41  ;;  %v404_v23 = vadd.s32 %v403_v22, %v394_v21  ;;  %v475_v56 = vor.u32 8388608, %v1546_v24 }
  0xc5   : > { %v263_v54 = vclz %v262_v51  ;;  %v251_v59 = vadd.s32 %v1490_v14, %v1501_v20  ;;  %v282_v11 = vsel %vm159_vm6, %v281_v28, %v257_v5  ;;  %v405_v60 = vmul.u32 %v1401_v29, %v351_v37 }
  0xc6   : > { %v1569_v61 = vshrl.u32 %v479_v25, 5  ;;  %vm407_vm7 = vc.u32 %v1559_v52, %v1561_v55  ;;  %v408_v32 = vadd.s32 1, %v404_v23  ;;  %v485_v34 = vshrl.u32 %v1307_v40, %v1550_v48 }
  0xc7   : > { %v1172_v62 = vadd.s32 4294967294, %v263_v54  ;;  %v484_v27 = vshll.u32 %v1306_v38, %v481_v43  ;;  %v488_v14 = vshrl.u32 %v1308_v44, %v1550_v48  ;;  %v491_v20 = vshrl.u32 %v1309_v47, %v1550_v48 }
  0xc8   : > { %v494_v29 = vshrl.u32 %v1310_v50, %v1550_v48  ;;  %v409_v35 = vsel %vm407_vm7, %v408_v32, %v404_v23  ;;  %v487_v63 = vshll.u32 %v1307_v40, %v481_v43  ;;  %v493_v1 = vshll.u32 %v1309_v47, %v481_v43 }
  0xc9   : > { %vm1173_vm8 = vcmp.lt.s32.totalorder %v1172_v62, 0  ;;  %v410_v2 = vadd.s32 %v409_v35, %v405_v60  ;;  %v490_v3 = vshll.u32 %v1308_v44, %v481_v43  ;;  %v497_v4 = vshrl.u32 %v1311_v53, %v1550_v48 }
  0xca   : > { %v266_v58 = vsel %vm1173_vm8, 0, %v1172_v62  ;;  %v486_v6 = vor.u32 %v485_v34, %v484_v27  ;;  %v495_v7 = vor.u32 %v494_v29, %v493_v1  ;;  %v1587_v16 = vor.u32 %v488_v14, %v487_v63 }
  0xcb   : > { %v267_v5 = vsub.s32 32, %v266_v58  ;;  %v271_v57 = vsub.s32 4294967266, %v266_v58  ;;  %v411_v12 = vadd.s32 536870912, %v410_v2  ;;  %v1589_v42 = vor.u32 %v491_v20, %v490_v3 }
  0xcc   : > { %v496_v40 = vshll.u32 %v1310_v50, %v481_v43  ;;  %v268_v17 = vshll.u32 %v259_v26, %v266_v58  ;;  %v1594_v44 = vsel %vm1554_vm5, 0, %v282_v11  ;;  %vm499_vm9 = vcmp.lt.s32.totalorder %v1569_v61, 1 }
  0xcd   : > { %v269_v47 = vshrl.u32 %v251_v59, %v267_v5  ;;  %v272_v18 = vadd.s32 127, %v271_v57  ;;  %v1596_v36 = vshrl.u32 %v411_v12, 30  ;;  %vm502_vm10 = vcmp.lt.s32.totalorder %v1569_v61, 4 }
  0xce   : > { %v498_v53 = vor.u32 %v497_v4, %v496_v40  ;;  %vm501_vm11 = vcmp.lt.s32.totalorder %v1569_v61, 3  ;;  %v508_v50 = vsel %vm502_vm10, %v495_v7, 920167782  ;;  %v507_v30 = vsel %vm499_vm9, %v486_v6, %v1587_v16 }
  0xcf   : > { %v270_v19 = vor.u32 %v269_v47, %v268_v17  ;;  %v273_v25 = vshll.u32 %v272_v18, 23  ;;  %v413_v26 = vshll.u32 %v1596_v36, 30  ;;  %v509_v33 = vsel %vm501_vm11, %v1589_v42, %v508_v50 }
  0xd0   : > { %v511_v41 = vsel %vm499_vm9, %v1587_v16, %v1589_v42  ;;  %v1614_v31 = vshll.u32 %v475_v56, 8  ;;  %v301_v24 = vadd.s32 3, %v1594_v44  ;;  %vm500_vm12 = vcmp.lt.s32.totalorder %v1569_v61, 2 }
  0xd1   : > { %v274_v39 = vor.u32 4788187, %v273_v25  ;;  %v414_v43 = vsub.s32 %v410_v2, %v413_v26  ;;  %v512_v45 = vsel %vm502_vm10, %v498_v53, 1326507024  ;;  %v277_v46 = vcvt.s32.f32 %v270_v19 }
  0xd2   : > { %v510_v37 = vsel %vm500_vm12, %v507_v30, %v509_v33  ;;  %v513_v21 = vsel %vm501_vm11, %v495_v7, %v512_v45  ;;  %v516_v23 = vand.u32 65535, %v1614_v31  ;;  %v517_v60 = vshrl.u32 %v1614_v31, 16 }
  0xd3   : > { %v275_v28 = vand.u32 2147483647, %v274_v39  ;;  %vm415_vm13 = vcmp.lt.s32.totalorder %v414_v43, 0  ;;  %v416_v22 = vsub.s32 0, %v414_v43  ;;  %v514_v51 = vsel %vm500_vm12, %v511_v41, %v513_v21 }
  0xd4   : > { %v518_v56 = vand.u32 65535, %v514_v51  ;;  %v519_v59 = vshrl.u32 %v514_v51, 16  ;;  %v540_v62 = vand.u32 65535, %v510_v37  ;;  %v1628_v34 = vand.u32 3, %v301_v24 }
  0xd5   : > { %v278_v54 = vmul.f32 %v277_v46, %v275_v28  ;;  %v417_v11 = vsel %vm415_vm13, %v416_v22, %v414_v43  ;;  %v406_v20 = vadd.s32 %v1561_v55, %v1559_v52  ;;  %v483_v29 = vshrl.u32 %v1306_v38, %v1550_v48 }
  0xd6   : > { %v418_v27 = vclz %v417_v11  ;;  %v521_v14 = vmul.u32 %v519_v59, %v516_v23  ;;  %v1634_v35 = vmul.u32 %v518_v56, %v517_v60  ;;  %v541_v63 = vshrl.u32 %v510_v37, 16 }
  0xd7   : > { %v279_v32 = vxor.u32 2147483648, %v278_v54  ;;  %v520_v2 = vmul.u32 %v518_v56, %v516_v23  ;;  %v1643_v5 = vsel %vm499_vm9, %v483_v29, %v486_v6  ;;  %v523_v52 = vmul.u32 %v519_v59, %v517_v60 }
  0xd8   : > { %v1175_v58 = vadd.s32 4294967294, %v418_v27  ;;  %v524_v3 = vshll.u32 %v521_v14, 16  ;;  %v542_v55 = vmul.u32 %v540_v62, %v516_v23  ;;  %v526_v7 = vshll.u32 %v1634_v35, 16 }
  0xd9   : > { %v280_v1 = vsel %vm159_vm6, %v279_v32, %v278_v54  ;;  %v543_v40 = vmul.u32 %v541_v63, %v516_v23  ;;  %v544_v18 = vmul.u32 %v540_v62, %v517_v60  ;;  %v525_v41 = vshrl.u32 %v521_v14, 16 }
  0xda   : > { %v283_v4 = vsel %vm1554_vm5, %v1384_v8, %v280_v1  ;;  %vm1176_vm14 = vcmp.lt.s32.totalorder %v1175_v58, 0  ;;  %vm528_vm15 = vc.u32 %v520_v2, %v524_v3  ;;  %v530_v48 = vadd.s32 %v524_v3, %v520_v2 }
  0xdb   : > { %v285_v38 = vmul.f32 %v283_v4, %v283_v4  ;;  %v421_v57 = vsel %vm1176_vm14, 0, %v1175_v58  ;;  %v529_v12 = vsel %vm528_vm15, 1, %v1305_v0  ;;  %v546_v6 = vshll.u32 %v543_v40, 16 }
  0xdc   : > { %v422_v49 = vsub.s32 32, %v421_v57  ;;  %v426_v53 = vsub.s32 4294967266, %v421_v57  ;;  %v531_v19 = vadd.s32 %v529_v12, %v523_v52  ;;  %vm532_vm0 = vc.u32 %v530_v48, %v526_v7 }
  0xdd   : > { %v286_v17 = vmul.f32 -0.001358992, %v285_v38  ;;  %v293_v47 = vmul.f32 -0.00019511016, %v285_v38  ;;  %v533_v30 = vsel %vm532_vm0, 1, %v1305_v0  ;;  %v423_v33 = vshll.u32 %v414_v43, %v421_v57 }
  0xde   : > { %v424_v26 = vshrl.u32 %v406_v20, %v422_v49  ;;  %v427_v39 = vadd.s32 127, %v426_v53  ;;  %v535_v24 = vadd.s32 %v533_v30, %v531_v19  ;;  %v545_v46 = vmul.u32 %v541_v63, %v517_v60 }
  0xdf   : > { %v287_v25 = vadd.f32 0.041655596, %v286_v17  ;;  %v294_v50 = vadd.f32 0.008332121, %v293_v47  ;;  %v548_v37 = vshll.u32 %v544_v18, 16  ;;  %vm550_vm1 = vc.u32 %v542_v55, %v546_v6 }
  0xe0   : > { %v425_v21 = vor.u32 %v424_v26, %v423_v33  ;;  %v428_v22 = vshll.u32 %v427_v39, 23  ;;  %v552_v51 = vadd.s32 %v546_v6, %v542_v55  ;;  %v536_v56 = vadd.s32 %v535_v24, %v525_v41 }
  0xe1   : > { %v288_v45 = vmul.f32 %v287_v25, %v285_v38  ;;  %v295_v28 = vmul.f32 %v294_v50, %v285_v38  ;;  %v551_v59 = vsel %vm550_vm1, 1, %v1305_v0  ;;  %v504_v43 = vsel %vm502_vm10, %v1589_v42, 2102212464 }
  0xe2   : > { %v429_v11 = vor.u32 4788187, %v428_v22  ;;  %v553_v62 = vadd.s32 %v551_v59, %v545_v46  ;;  %vm554_vm2 = vc.u32 %v552_v51, %v548_v37  ;;  %v527_v27 = vshrl.u32 %v1634_v35, 16 }
  0xe3   : > { %v289_v54 = vadd.f32 -0.4999988, %v288_v45  ;;  %v296_v23 = vadd.f32 -0.16666654, %v295_v28  ;;  %v555_v14 = vsel %vm554_vm2, 1, %v1305_v0  ;;  %v432_v29 = vcvt.s32.f32 %v425_v21 }
  0xe4   : > { %v430_v20 = vand.u32 2147483647, %v429_v11  ;;  %v547_v63 = vshrl.u32 %v543_v40, 16  ;;  %v557_v1 = vadd.s32 %v555_v14, %v553_v62  ;;  %v505_v42 = vsel %vm501_vm11, %v1587_v16, %v504_v43 }
  0xe5   : > { %v290_v32 = vmul.f32 %v289_v54, %v285_v38  ;;  %v297_v60 = vmul.f32 %v296_v23, %v285_v38  ;;  %v1660_v3 = vadd.s32 %v536_v56, %v527_v27  ;;  %v549_v55 = vshrl.u32 %v544_v18, 16 }
  0xe6   : > { %v433_v52 = vmul.f32 %v432_v29, %v430_v20  ;;  %v558_v38 = vadd.s32 %v557_v1, %v547_v63  ;;  %vm314_vm3 = vcmp.lt.s32.totalorder %v1386_v9, 0  ;;  %v1668_v48 = vadd.s32 %v552_v51, %v548_v37 }
  0xe7   : > { %v1655_v58 = vadd.f32 1.0, %v290_v32  ;;  %v298_v2 = vadd.f32 1.0, %v297_v60  ;;  %vm1672_vm4 = vcmp.le.f32.partialorder %v312_v13, 0.7853982  ;;  %v506_v7 = vsel %vm500_vm12, %v1643_v5, %v505_v42 }
  0xe8   : > { %v434_v16 = vxor.u32 2147483648, %v433_v52  ;;  %v559_v12 = vadd.s32 %v558_v38, %v549_v55  ;;  %vm303_vm5 = vcmp.lt.s32.totalorder %v1628_v34, 2  ;;  %vm304_vm6 = vcmp.eq.s32.totalorder %v1628_v34, 0 }
  0xe9   : > { %v1664_v0 = vmul.f32 %v298_v2, %v283_v4  ;;  %v308_v35 = vxor.u32 2147483648, %v1655_v58  ;;  %vm562_vm7 = vc.u32 %v1660_v3, %v1668_v48  ;;  %vm307_vm8 = vcmp.eq.s32.totalorder %v1628_v34, 2 }
  0xea   : > { %v435_v13 = vsel %vm314_vm3, %v434_v16, %v433_v52  ;;  %v436_v40 = vsub.s32 4, %v1596_v36  ;;  %v563_v17 = vadd.s32 1, %v559_v12  ;;  %v560_v34 = vmul.u32 %v1614_v31, %v506_v7 }
  0xeb   : > { %v305_v4 = vxor.u32 2147483648, %v1664_v0  ;;  %v309_v5 = vsel %vm307_vm8, %v308_v35, %v1664_v0  ;;  %v438_v47 = vsel %vm1672_vm4, %v1386_v9, %v435_v13  ;;  %vm300_vm9 = vweird.f32 %v1384_v8 }
  0xec   : > { %v440_v18 = vmul.f32 %v438_v47, %v438_v47  ;;  %v564_v53 = vsel %vm562_vm7, %v563_v17, %v559_v12  ;;  %v437_v26 = vsel %vm314_vm3, %v436_v40, %v1596_v36  ;;  %vm455_vm11 = vweird.f32 %v1386_v9 }
  0xed   : > { %v306_v61 = vsel %vm304_vm6, %v1655_v58, %v305_v4  ;;  %v565_v6 = vadd.s32 %v564_v53, %v560_v34  ;;  %v439_v41 = vsel %vm1672_vm4, 0, %v437_v26  ;;  %v769_v1 = vand.u32 3, %v1594_v44 }
  0xee   : > { %v310_v49 = vsel %vm303_vm5, %v306_v61, %v309_v5  ;;  %v441_v25 = vmul.f32 -0.001358992, %v440_v18  ;;  %v448_v50 = vmul.f32 -0.00019511016, %v440_v18  ;;  %v456_v21 = vadd.s32 3, %v439_v41 }
  0xef   : > { %v311_v19 = vsel %vm300_vm9, nan, %v310_v49  ;;  %v566_v31 = vadd.s32 536870912, %v565_v6  ;;  %v923_v2 = vand.u32 3, %v439_v41  ;;  %v561_v52 = vadd.s32 %v1668_v48, %v1660_v3 }
  0xf0   : > { %622 = vst [vmem:[%s1701_s30] sm:$0xff] %v311_v19  ;;  %v442_v30 = vadd.f32 0.041655596, %v441_v25  ;;  %v449_v33 = vadd.f32 0.008332121, %v448_v50  ;;  %v457_v59 = vand.u32 3, %v456_v21  ;;  %vm770_vm0 = vcmp.lt.s32.totalorder %v769_v1, 2 }
  0xf1   : > { %v1707_v39 = vshrl.u32 %v566_v31, 30  ;;  %vm771_vm1 = vcmp.eq.s32.totalorder %v769_v1, 0  ;;  %vm774_vm2 = vcmp.eq.s32.totalorder %v769_v1, 2  ;;  %vm924_vm3 = vcmp.lt.s32.totalorder %v923_v2, 2 }
  0xf2   : > { %v443_v24 = vmul.f32 %v442_v30, %v440_v18  ;;  %v450_v45 = vmul.f32 %v449_v33, %v440_v18  ;;  %vm459_vm12 = vcmp.eq.s32.totalorder %v457_v59, 0  ;;  %vm462_vm13 = vcmp.eq.s32.totalorder %v457_v59, 2 }
  0xf3   : > { %v568_v28 = vshll.u32 %v1707_v39, 30  ;;  %vm458_vm14 = vcmp.lt.s32.totalorder %v457_v59, 2  ;;  %vm925_vm4 = vcmp.eq.s32.totalorder %v923_v2, 0  ;;  %vm928_vm5 = vcmp.eq.s32.totalorder %v923_v2, 2 }
  0xf4   : > { %v444_v46 = vadd.f32 -0.4999988, %v443_v24  ;;  %v451_v37 = vadd.f32 -0.16666654, %v450_v45  ;;  %v773_v3 = vsel %vm771_vm1, %v1655_v58, %v305_v4  ;;  %v776_v48 = vsel %vm774_vm2, %v308_v35, %v1664_v0 }
  0xf5   : > { %v569_v22 = vsub.s32 %v565_v6, %v568_v28  ;;  %v777_v61 = vsel %vm770_vm0, %v773_v3, %v776_v48  ;;  %vm469_vm6 = vcmp.lt.s32.totalorder %v1388_v10, 0  ;;  %vm468_vm7 = vcmp.le.f32.partialorder %v467_v15, 0.7853982 }
  0xf6   : > { %v445_v51 = vmul.f32 %v444_v46, %v440_v18  ;;  %v452_v54 = vmul.f32 %v451_v37, %v440_v18  ;;  %v591_v0 = vsub.s32 4, %v1707_v39 }
  0xf7   : > { %vm570_vm10 = vcmp.lt.s32.totalorder %v569_v22, 0  ;;  %v571_v36 = vsub.s32 0, %v569_v22 }
  0xf8   : > { %v446_v23 = vadd.f32 1.0, %v445_v51  ;;  %v453_v56 = vadd.f32 1.0, %v452_v54  ;;  %v592_v9 = vsel %vm469_vm6, %v591_v0, %v1707_v39 }
  0xf9   : > { %v572_v11 = vsel %vm570_vm10, %v571_v36, %v569_v22  ;;  %v594_v26 = vsel %vm468_vm7, 0, %v592_v9 }
  0xfa   : > { %v454_v43 = vmul.f32 %v453_v56, %v438_v47  ;;  %v463_v62 = vxor.u32 2147483648, %v446_v23  ;;  %v573_v32 = vclz %v572_v11  ;;  %v778_v47 = vsel %vm300_vm9, nan, %v777_v61 }
  0xfb   : > { %1087 = vst [vmem:[%s1701_s30 + $0x18] sm:$0xff] %v778_v47  ;;  %v611_v24 = vadd.s32 3, %v594_v26  ;;  %v1077_v21 = vand.u32 3, %v594_v26 }
  0xfc   : > { %v460_v60 = vxor.u32 2147483648, %v454_v43  ;;  %v1178_v27 = vadd.s32 4294967294, %v573_v32  ;;  %v464_v20 = vsel %vm462_vm13, %v463_v62, %v454_v43  ;;  %v930_v40 = vsel %vm928_vm5, %v463_v62, %v454_v43 }
  0xfd   : > { %v612_v37 = vand.u32 3, %v611_v24  ;;  %vm1082_vm13 = vcmp.eq.s32.totalorder %v1077_v21, 2 }
  0xfe   : > { %v461_v14 = vsel %vm459_vm12, %v446_v23, %v460_v60  ;;  %vm1179_vm15 = vcmp.lt.s32.totalorder %v1178_v27, 0  ;;  %v927_v13 = vsel %vm925_vm4, %v446_v23, %v460_v60  ;;  %vm1079_vm12 = vcmp.eq.s32.totalorder %v1077_v21, 0 }
  0xff   : > { %v465_v29 = vsel %vm458_vm14, %v461_v14, %v464_v20  ;;  %v576_v63 = vsel %vm1179_vm15, 0, %v1178_v27  ;;  %v931_v5 = vsel %vm924_vm3, %v927_v13, %v930_v40  ;;  %vm613_vm8 = vcmp.lt.s32.totalorder %v612_v37, 2 }
 0x100   : > { %v466_v42 = vsel %vm455_vm11, nan, %v465_v29  ;;  %v577_v55 = vsub.s32 32, %v576_v63  ;;  %v581_v38 = vsub.s32 4294967266, %v576_v63  ;;  %v578_v57 = vshll.u32 %v569_v22, %v576_v63 }
 0x101   : > { %623 = vst [vmem:[%s1701_s30 + $0x8] sm:$0xff] %v466_v42  ;;  %v932_v34 = vsel %vm455_vm11, nan, %v931_v5  ;;  %vm614_vm9 = vcmp.eq.s32.totalorder %v612_v37, 0  ;;  %vm617_vm10 = vcmp.eq.s32.totalorder %v612_v37, 2  ;;  %vm1078_vm11 = vcmp.lt.s32.totalorder %v1077_v21, 2 }
 0x102   : > { %v579_v16 = vshrl.u32 %v561_v52, %v577_v55  ;;  %v582_v7 = vadd.s32 127, %v581_v38  ;;  %1088 = vst [vmem:[%s1701_s30 + $0x20] sm:$0xff] %v932_v34  ;;  %vm610_vm14 = vweird.f32 %v1388_v10 }
 0x104   : > { %v580_v12 = vor.u32 %v579_v16, %v578_v57  ;;  %v583_v44 = vshll.u32 %v582_v7, 23 }
 0x106   : > { %v584_v17 = vor.u32 4788187, %v583_v44  ;;  %v587_v18 = vcvt.s32.f32 %v580_v12 }
 0x108   : > { %v585_v49 = vand.u32 2147483647, %v584_v17 }
 0x10a   : > { %v588_v4 = vmul.f32 %v587_v18, %v585_v49 }
 0x10c   : > { %v589_v53 = vxor.u32 2147483648, %v588_v4 }
 0x10e   : > { %v590_v58 = vsel %vm469_vm6, %v589_v53, %v588_v4 }
 0x10f   : > { %v593_v8 = vsel %vm468_vm7, %v1388_v10, %v590_v58 }
 0x110   : > { %v595_v35 = vmul.f32 %v593_v8, %v593_v8 }
 0x112   : > { %v596_v19 = vmul.f32 -0.001358992, %v595_v35  ;;  %v603_v6 = vmul.f32 -0.00019511016, %v595_v35 }
 0x114   : > { %v597_v25 = vadd.f32 0.041655596, %v596_v19  ;;  %v604_v50 = vadd.f32 0.008332121, %v603_v6 }
 0x116   : > { %v598_v31 = vmul.f32 %v597_v25, %v595_v35  ;;  %v605_v30 = vmul.f32 %v604_v50, %v595_v35 }
 0x118   : > { %v599_v33 = vadd.f32 -0.4999988, %v598_v31  ;;  %v606_v41 = vadd.f32 -0.16666654, %v605_v30 }
 0x11a   : > { %v600_v15 = vmul.f32 %v599_v33, %v595_v35  ;;  %v607_v45 = vmul.f32 %v606_v41, %v595_v35 }
 0x11c   : > { %v601_v28 = vadd.f32 1.0, %v600_v15  ;;  %v608_v46 = vadd.f32 1.0, %v607_v45 }
 0x11e   : > { %v609_v22 = vmul.f32 %v608_v46, %v593_v8  ;;  %v618_v39 = vxor.u32 2147483648, %v601_v28 }
 0x120   : > { %v615_v51 = vxor.u32 2147483648, %v609_v22  ;;  %v619_v36 = vsel %vm617_vm10, %v618_v39, %v609_v22  ;;  %v1084_v56 = vsel %vm1082_vm13, %v618_v39, %v609_v22 }
 0x122   : > { %v616_v54 = vsel %vm614_vm9, %v601_v28, %v615_v51  ;;  %v1081_v23 = vsel %vm1079_vm12, %v601_v28, %v615_v51 }
 0x123   : > { %v620_v59 = vsel %vm613_vm8, %v616_v54, %v619_v36  ;;  %v1085_v11 = vsel %vm1078_vm11, %v1081_v23, %v1084_v56 }
 0x124   : > { %v621_v43 = vsel %vm610_vm14, nan, %v620_v59  ;;  %v1086_v62 = vsel %vm610_vm14, nan, %v1085_v11 }
 0x125   : > { %624 = vst [vmem:[%s1701_s30 + $0x10] sm:$0xff] %v621_v43 }
 0x126   : > { %1089 = vst [vmem:[%s1701_s30 + $0x28] sm:$0xff] %v1086_v62 }
 0x127   : > { %1268 = shalt.err (!%p1265_p3)
}
 0x128   : > { %1194 = dma.vmem_to_hbm [thread:$0]  (%p1365_p5), %s1105_s7, 768, %s1107_s8, %s1091_s13  }
 0x129 PF: > { %p1200_p4 = scmp.ge.s32.totalorder %s1303_s12, 2  ;;  %s1118_s25 = sand.u32 1, %s1291_s9  }
 0x12a   : > { %s1119_s26 = scalar_lea.sflag [#allocation3], %s1118_s25 }
 0x12b   : > { %p1197_p7 = pnand %p1200_p4, %p1369_p6 }
 0x12d   : > { %p1198_p8 = pneg %p1197_p7 }
 0x12f   : > { %1286 = dma.done.wait (%p1198_p8), %s1119_s26, 768  }
 0x130   : > { %1288 = vsyncadd (%p1198_p8), %s1119_s26, 4294966528  ;;  %p12_p9 = scmp.ge.s32.totalorder %s1352_s15, 4   ;;  %s1783_s9 = smov %s1295_s10 }
 0x131   : > { %s1784_s10 = smov %s1299_s11  ;;  %s1785_s11 = smov %s1363_s18 }
 0x132   : > { %s1786_s12 = smov %s1352_s15  ;;  %14 = sbr.rel (!%p12_p9) target bundleno = 3 (0x3), region = 63 }
 0x137   :  { %1125 = vsyncpa [#allocation3], 1 }
 0x138   :  { %1127 = vsyncpa [#allocation3 + $0x1], 1 }

</bundles_post_ra>
